<compile_context>
chip_gen: v7x
topology: tpu7x:2x2x1
jax: 0.10.0
libtpu: 0.0.40
codegen_flags: <defaults>
</compile_context>

<pallas_src>
import functools
import math

import jax
import jax.numpy as jnp
from jax.experimental import pallas as pl
from jax.experimental.pallas import tpu as pltpu


_MAX_TILE_ROWS = 2048


def _physical_vmem_bytes():
    try:
        return int(pltpu.get_tpu_info().vmem_capacity_bytes)
    except Exception:
        return 64 * 1024 * 1024  # conservative fallback (v7x per-TC size)


def _pick_tile_rows(rows, d_model, itemsize):
    """Largest row tile whose double-buffered in+out pipeline buffers fit in
    ~1/4 of physical VMEM (16 MiB on v7x, 32 MiB on v5e/v6e)."""
    budget = max(8 * 1024 * 1024, _physical_vmem_bytes() // 4)
    # 2 pipeline buffers x (input + output) x tile bytes
    tile = budget // (4 * d_model * itemsize)
    tile = max(8, min(int(tile), _MAX_TILE_ROWS))
    if rows > 8:
        # Keep at least 2 grid steps when possible so the "parallel" axis can
        # shard across v7x's two TensorCores (near-free on v5e/v6e: one extra
        # ~0.35us grid step).
        half = ((rows + 1) // 2 + 7) // 8 * 8
        tile = min(tile, half)
    if tile >= rows:
        return rows                      # single full-extent block (always legal)
    return max(8, (tile // 8) * 8)       # sublane-aligned tiling otherwise


def _norm_kernel(x_ref, alpha_ref, bias_ref, o_ref, *, eps, d_model):
    # x_ref: (tile_rows, d_model); alpha/bias: (1, d_model) f32, VMEM-resident.
    x = x_ref[...].astype(jnp.float32)
    n = float(d_model)

    # One pass over x: sum and sum-of-squares (halves the cross-lane reduction
    # work vs. mean-then-centered-sum-of-squares).
    s1 = jnp.sum(x, axis=-1, keepdims=True)
    s2 = jnp.sum(x * x, axis=-1, keepdims=True)
    mean = s1 * (1.0 / n)

    # PyTorch x.std(): UNBIASED (N-1) estimator; eps is added to std, not var.
    denom = 1.0 / float(max(d_model - 1, 1))
    var = jnp.maximum(s2 - n * mean * mean, 0.0) * denom
    std = jnp.sqrt(var)

    # Per-row reciprocal on the EUP (free VLIW slot) instead of a full-tile
    # VALU divide; one Newton-Raphson step restores full f32 accuracy at the
    # cost of 2 VALU ops on a (tile_rows, 1) vector.
    r = std + eps
    inv = pl.reciprocal(r, approx=True)
    inv = inv * (2.0 - r * inv)

    out = (x - mean) * inv * alpha_ref[...] + bias_ref[...]
    o_ref[...] = out.astype(o_ref.dtype)


def norm_forward(x, alpha, bias, eps=1e-6, tile_rows=None):
    """out = alpha * (x - mean) / (unbiased_std + eps) + bias over the last dim.

    x: (..., d_model); alpha, bias: (d_model,).
    """
    orig_shape = x.shape
    d_model = int(orig_shape[-1])
    rows = int(math.prod(orig_shape[:-1]))
    x2d = x.reshape(rows, d_model)  # metadata-only flatten, no HBM copy

    if tile_rows is None:
        tile_rows = _pick_tile_rows(rows, d_model, x2d.dtype.itemsize)
    else:
        tile_rows = int(tile_rows)
        if tile_rows >= rows:
            tile_rows = rows
        else:
            tile_rows = max(8, (tile_rows // 8) * 8)  # sublane alignment

    # Params cast once here (not per grid step inside the kernel); constant
    # (0, 0) block index keeps them resident in VMEM across the whole grid.
    alpha2d = alpha.astype(jnp.float32).reshape(1, d_model)
    bias2d = bias.astype(jnp.float32).reshape(1, d_model)

    # Partial trailing block (rows % tile_rows != 0) is handled by Pallas with
    # a masked store; rows are independent, so no wrapper-side pad/slice.
    grid = (pl.cdiv(rows, tile_rows),)

    # Explicit VMEM cap: 2x in + 2x out pipeline buffers + params + slack.
    pipeline_bytes = 4 * tile_rows * d_model * x2d.dtype.itemsize
    param_bytes = 4 * d_model * 4
    vmem_limit = max(32 * 1024 * 1024, int(1.5 * (pipeline_bytes + param_bytes)))

    kernel = functools.partial(_norm_kernel, eps=float(eps), d_model=d_model)

    out = pl.pallas_call(
        kernel,
        out_shape=jax.ShapeDtypeStruct((rows, d_model), x.dtype),
        grid_spec=pltpu.PrefetchScalarGridSpec(
            num_scalar_prefetch=0,
            grid=grid,
            in_specs=[
                pl.BlockSpec((tile_rows, d_model), lambda i: (i, 0)),
                pl.BlockSpec((1, d_model), lambda i: (0, 0)),
                pl.BlockSpec((1, d_model), lambda i: (0, 0)),
            ],
            out_specs=pl.BlockSpec((tile_rows, d_model), lambda i: (i, 0)),
        ),
        compiler_params=pltpu.CompilerParams(
            dimension_semantics=("parallel",),
            vmem_limit_bytes=vmem_limit,
        ),
    )(x2d, alpha2d, bias2d)

    return out.reshape(orig_shape)


def norm_reference(x, alpha, bias, eps=1e-6):
    mean = jnp.mean(x, axis=-1, keepdims=True)
    # unbiased std, as in torch.Tensor.std()
    var = jnp.sum((x - mean) ** 2, axis=-1, keepdims=True) / (x.shape[-1] - 1)
    std = jnp.sqrt(var)
    return alpha * (x - mean) / (std + eps) + bias


if __name__ == "__main__":
    key = jax.random.PRNGKey(0)

    # Lane-dense feature dim (multiple of 128) so output stores are unmasked
    # full-lane stores (perf-review item); shapes kept small.
    batch, seq, d_model = 2, 192, 128
    x = jax.random.normal(key, (batch, seq, d_model), dtype=jnp.float32)

    # Deterministic params matching nn.Parameter(torch.ones/zeros(d_model))
    alpha = jnp.ones((d_model,), dtype=jnp.float32)
    bias = jnp.zeros((d_model,), dtype=jnp.float32)

    out = jax.block_until_ready(norm_forward(x, alpha, bias))
    ref = norm_reference(x, alpha, bias)
    assert out.shape == x.shape
    assert jnp.allclose(out, ref, atol=1e-4, rtol=1e-4)

    # Ragged row count with a forced small tile: exercises the cdiv grid and
    # the Pallas-handled partial trailing block (no wrapper-side pad or slice).
    x2 = jax.random.normal(jax.random.PRNGKey(1), (1, 350, d_model),
                           dtype=jnp.float32)
    out2 = jax.block_until_ready(norm_forward(x2, alpha, bias, tile_rows=128))
    ref2 = norm_reference(x2, alpha, bias)
    assert out2.shape == x2.shape
    assert jnp.allclose(out2, ref2, atol=1e-4, rtol=1e-4)

    print("KERNEL_OK")
</pallas_src>

<mosaic_0001>
module attributes {stable_mosaic.version = 11 : i64} {
  func.func @_norm_kernel(%arg0: i32, %arg1: memref<192x128xf32, #tpu.memory_space<vmem>>, %arg2: memref<1x128xf32, #tpu.memory_space<vmem>>, %arg3: memref<1x128xf32, #tpu.memory_space<vmem>>, %arg4: memref<192x128xf32, #tpu.memory_space<vmem>>) attributes {dimension_semantics = [#tpu.dimension_semantics<parallel>], iteration_bounds = array<i64: 2>, scalar_prefetch = 0 : i64, scratch_operands = 0 : i64, tpu.core_type = #tpu.core_type<tc>, window_params = [{transform_indices = @transform_0, window_bounds = array<i64: 192, 128>}, {pipeline_mode = #tpu.pipeline_mode<synchronous>, transform_indices = @transform_1, window_bounds = array<i64: 1, 128>}, {pipeline_mode = #tpu.pipeline_mode<synchronous>, transform_indices = @transform_2, window_bounds = array<i64: 1, 128>}, {transform_indices = @transform_3, window_bounds = array<i64: 192, 128>}]} {
    %c0 = arith.constant 0 : index
    %c0_0 = arith.constant 0 : index
    %0 = vector.load %arg1[%c0, %c0_0] : memref<192x128xf32, #tpu.memory_space<vmem>>, vector<192x128xf32>
    %cst = arith.constant dense<0.000000e+00> : vector<192xf32>
    %1 = vector.multi_reduction <add>, %0, %cst [1] : vector<192x128xf32> to vector<192xf32>
    %2 = vector.shape_cast %1 : vector<192xf32> to vector<192x1xf32>
    %3 = arith.mulf %0, %0 : vector<192x128xf32>
    %cst_1 = arith.constant dense<0.000000e+00> : vector<192xf32>
    %4 = vector.multi_reduction <add>, %3, %cst_1 [1] : vector<192x128xf32> to vector<192xf32>
    %5 = vector.shape_cast %4 : vector<192xf32> to vector<192x1xf32>
    %cst_2 = arith.constant 7.812500e-03 : f32
    %6 = vector.broadcast %cst_2 : f32 to vector<192x1xf32>
    %7 = arith.mulf %2, %6 : vector<192x1xf32>
    %cst_3 = arith.constant 1.280000e+02 : f32
    %8 = vector.broadcast %cst_3 : f32 to vector<192x1xf32>
    %9 = arith.mulf %8, %7 : vector<192x1xf32>
    %10 = arith.mulf %9, %7 : vector<192x1xf32>
    %11 = arith.subf %5, %10 : vector<192x1xf32>
    %cst_4 = arith.constant 0.000000e+00 : f32
    %12 = vector.broadcast %cst_4 : f32 to vector<192x1xf32>
    %13 = arith.maximumf %11, %12 : vector<192x1xf32>
    %cst_5 = arith.constant 0.00787401571 : f32
    %14 = vector.broadcast %cst_5 : f32 to vector<192x1xf32>
    %15 = arith.mulf %13, %14 : vector<192x1xf32>
    %16 = math.sqrt %15 : vector<192x1xf32>
    %cst_6 = arith.constant 9.99999997E-7 : f32
    %17 = vector.broadcast %cst_6 : f32 to vector<192x1xf32>
    %18 = arith.addf %16, %17 : vector<192x1xf32>
    %19 = tpu.reciprocal %18 {approx = true} : vector<192x1xf32> -> vector<192x1xf32>
    %20 = arith.mulf %18, %19 : vector<192x1xf32>
    %cst_7 = arith.constant 2.000000e+00 : f32
    %21 = vector.broadcast %cst_7 : f32 to vector<192x1xf32>
    %22 = arith.subf %21, %20 : vector<192x1xf32>
    %23 = arith.mulf %19, %22 : vector<192x1xf32>
    %24 = vector.broadcast %7 : vector<192x1xf32> to vector<192x128xf32>
    %25 = arith.subf %0, %24 : vector<192x128xf32>
    %26 = vector.broadcast %23 : vector<192x1xf32> to vector<192x128xf32>
    %27 = arith.mulf %25, %26 : vector<192x128xf32>
    %c0_8 = arith.constant 0 : index
    %c0_9 = arith.constant 0 : index
    %28 = vector.load %arg2[%c0_8, %c0_9] : memref<1x128xf32, #tpu.memory_space<vmem>>, vector<1x128xf32>
    %29 = vector.broadcast %28 : vector<1x128xf32> to vector<192x128xf32>
    %30 = arith.mulf %27, %29 : vector<192x128xf32>
    %c0_10 = arith.constant 0 : index
    %c0_11 = arith.constant 0 : index
    %31 = vector.load %arg3[%c0_10, %c0_11] : memref<1x128xf32, #tpu.memory_space<vmem>>, vector<1x128xf32>
    %32 = vector.broadcast %31 : vector<1x128xf32> to vector<192x128xf32>
    %33 = arith.addf %30, %32 : vector<192x128xf32>
    %c0_12 = arith.constant 0 : index
    %c0_13 = arith.constant 0 : index
    %34 = vector.load %arg4[%c0_12, %c0_13] : memref<192x128xf32, #tpu.memory_space<vmem>>, vector<192x128xf32>
    tpu.vector_store %arg4[%c0_12, %c0_13], %33 {strides = array<i32>} : memref<192x128xf32, #tpu.memory_space<vmem>>, vector<192x128xf32>,
    return
  }
  func.func @transform_0(%arg0: i32) -> (i32, i32) {
    %c0_i32 = arith.constant 0 : i32
    %c0_i32_0 = arith.constant 0 : i32
    return %arg0, %c0_i32 : i32, i32
  }
  func.func @transform_1(%arg0: i32) -> (i32, i32) {
    %c0_i32 = arith.constant 0 : i32
    %c0_i32_0 = arith.constant 0 : i32
    %c0_i32_1 = arith.constant 0 : i32
    return %c0_i32, %c0_i32_0 : i32, i32
  }
  func.func @transform_2(%arg0: i32) -> (i32, i32) {
    %c0_i32 = arith.constant 0 : i32
    %c0_i32_0 = arith.constant 0 : i32
    %c0_i32_1 = arith.constant 0 : i32
    return %c0_i32, %c0_i32_0 : i32, i32
  }
  func.func @transform_3(%arg0: i32) -> (i32, i32) {
    %c0_i32 = arith.constant 0 : i32
    %c0_i32_0 = arith.constant 0 : i32
    return %arg0, %c0_i32 : i32, i32
  }
}

</mosaic_0001>

<bundles_post_ra>
// kernel: tpu_custom_call.1
= control target key start
LH: loop header
LB: loop body
LE: loop exit
PB: predicated region body
PF: predicated region fallthrough
CT: control target
= control target key end

     0   :  { %8 = vsyncpa [#allocation3], 0  ;;  %s2240_s0 = inlined_call_operand.hbm [shape: f32[384,128], index: 0, kind: input, shape index: {}]   ;;  %s2241_s1 = inlined_call_operand.vmem [shape: f32[1,128], index: 1, kind: input, shape index: {}]   ;;  %s2242_s2 = inlined_call_operand.vmem [shape: f32[1,128], index: 2, kind: input, shape index: {}]   ;;  %s2243_s3 = inlined_call_operand.hbm [shape: f32[384,128], index: 3, kind: output, shape index: {}]  }
   0x1   :  { %10 = vsyncpa [#allocation3 + $0x1], 0 }
   0x2   :  { %11 = vsyncpa [#allocation4], 0 }
   0x3   :  { %13 = vsyncpa [#allocation4 + $0x1], 0  ;;  %s1282_s12 = smov 0   ;;  %s1284_s13 = smov 0  }
   0x4   :  { %s1286_s14 = smov 0   ;;  %s1288_s15 = smov 0  }
   0x5 LB: > { %s1303_s16 = sadd.s32 4294967295, %s1254_s15   ;;  %s988_s17 = sadd.s32 4294967294, %s1254_s15   ;;  %s1254_s15 = sphi %s1288_s15, %s2316_s15   ;;  %s1250_s14 = sphi %s1286_s14, %s2315_s14   ;;  %s1246_s13 = sphi %s1284_s13, %s2314_s13   ;;  %s1242_s12 = sphi %s1282_s12, %s2313_s12  }
   0x6   : > { %s1307_s18 = sadd.s32 1, %s1254_s15   ;;  %s26_s19 = sadd.s32 1, %s1250_s14 }
   0x7   : > { %s23_s20 = ssub.s32 %s1254_s15, %s1307_s18  ;;  %p33_p0 = scmp.ne.s32.totalorder %s1250_s14, %s1246_s13 }
   0x8   : > { %p24_p1 = scmp.eq.s32.totalorder %s23_s20, 0  ;;  %p34_p2 = scmp.eq.s32.totalorder %s1254_s15, 0 }
   0x9   : > { %p39_p3 = scmp.ne.s32.totalorder %s1246_s13, %s1242_s12  ;;  %p40_p4 = scmp.eq.s32.totalorder %s1303_s16, 0 }
   0xa   : > { %s1319_s21 = scalar_select %p24_p1, %s1250_s14, %s26_s19  }
   0xb   : > { %p35_p5 = por %p34_p2, %p33_p0  ;;  %p1321_p6 = por %p40_p4, %p39_p3 }
   0xc   : > { %p105_p7 = scmp.eq.s32.totalorder %s1303_s16, 1  ;;  %p111_p8 = scmp.eq.s32.totalorder %s988_s17, 1 }
   0xd   : > { %p1014_p10 = scmp.lt.s32.totalorder %s1254_s15, 2  ;;  %s137_s25 = sand.u32 1, %s1250_s14  }
   0xe   : > { %p1328_p11 = por %p105_p7, %p33_p0  ;;  %p1332_p12 = por %p111_p8, %p39_p3 }
   0xf   : > { %s998_s26 = smul.u32 3072, %s1254_s15  ;;  %p1343_p13 = pnand %p1014_p10, %p35_p5 }
  0x10   : > { %s2263_s23 = scalar_select %p1328_p11, 1, 0 }
  0x11   : > { %s2264_s24 = scalar_select %p1332_p12, 1, 0 }
  0x12   : > { %s1000_s27 = smul.u32 192, %s137_s25  ;;  %s1341_s30 = scalar_lea.hbm %s2240_s0, %s998_s26 }
  0x13   : > { %s1349_s7 = scalar_lea.sflag [#allocation3], %s137_s25  ;;  %s1158_s8 = scalar_lea.hbm %s1341_s30, 3072 }
  0x14   : > { %s141_s5 = scalar_lea.vmem [#allocation2], %s1000_s27  ;;  %p1159_p0 = scmp.ne.s32.totalorder %s1341_s30, %s1158_s8 }
  0x15   : > { %s148_s6 = sshll.u32 %s141_s5, 4  ;;  %p1160_p1 = pneg %p1343_p13  ;;  %s1347_s6 = int_to_ptr.vmem [resolvable:$true] %s148_s6 }
  0x16   : > { %s1163_s11 = scalar_lea.hbm %s2240_s0, 6144  ;;  %p1164_p4 = scmp.lt.u32.totalorder %s1341_s30, %s2240_s0 }
  0x17   : > { %p1161_p2 = pnand %p1160_p1, %p1159_p0  ;;  %p1165_p5 = scmp.lt.u32.totalorder %s1163_s11, %s1158_s8 }
  0x18   : > { %p1167_p8 = scmp.lt.u32.totalorder %s1158_s8, %s1341_s30 }
  0x19   : > { %p1162_p3 = pneg %p1161_p2  ;;  %p1166_p7 = por %p1165_p5, %p1164_p4 }
  0x1b   : > { %p1168_p10 = por %p1167_p8, %p1166_p7 }
  0x1d   : > { %p1169_p9 = pnand %p1168_p10, %p1162_p3 }
  0x1f   : > { %1172 = shalt.err (!%p1169_p9)
}
  0x20   : > { %s1173_s20 = scalar_lea.vmem %s1347_s6, 3072  ;;  %s1256_s25 = smov [#allocation2]  }
  0x21   : > { %p1174_p0 = scmp.ne.s32.totalorder %s1347_s6, %s1173_s20  ;;  %s1178_s26 = sshll.u32 %s1256_s25, 4  ;;  %s1179_s26 = int_to_ptr.vmem [resolvable:$false] %s1178_s26 }
  0x22   : > { %s1180_s27 = scalar_lea.vmem %s1179_s26, 6144  ;;  %p1181_p11 = scmp.lt.s32.totalorder %s1347_s6, %s1179_s26 }
  0x23   : > { %p1176_p2 = pnand %p1174_p0, %p1160_p1  ;;  %p1182_p4 = scmp.lt.s32.totalorder %s1180_s27, %s1173_s20 }
  0x25   : > { %p1177_p12 = pneg %p1176_p2  ;;  %p1183_p5 = por %p1182_p4, %p1181_p11 }
  0x27   : > { %p1184_p7 = pnand %p1183_p5, %p1177_p12 }
  0x29   : > { %1187 = shalt.err (!%p1184_p7)
}
  0x2a   : > { %s1257_s28 = smov 128   ;;  %s1258_s29 = smov 8  }
  0x2b   : > { %1009 = dma.hbm_to_vmem [thread:$0]  (!%p1343_p13), %s1341_s30, 3072, %s1347_s6, %s1349_s7, %s1257_s28, %s1257_s28, %s1258_s29  }
  0x2c   : > { %p992_p9 = scmp.ge.s32.totalorder %s1254_s15, 1  ;;  %p156_p1 = scmp.lt.s32.totalorder %s1254_s15, 3 }
  0x2e   : > { %p157_p3 = pnand %p992_p9, %p156_p1 }
  0x30   : > { %160 = sbr.rel (%p157_p3) target bundleno = 408 (0x198), region = 32 }
  0x37   : > { %s1380_s5 = sand.u32 1, %s1246_s13  }
  0x38   : > { %s1001_s8 = smul.u32 192, %s1380_s5  ;;  %s163_s9 = scalar_lea.sflag [#allocation3], %s1380_s5 }
  0x3a   : > { %s1386_s10 = scalar_lea.vmem [#allocation2], %s1001_s8 }
  0x3b   : > { %1233 = dma.done.wait (%p1321_p6), %s163_s9, 3072  }
  0x3c   : > { %1235 = vsyncadd (%p1321_p6), %s163_s9, 4294964224  ;;  %v1393_v0 = vld [vmem:[%s1386_s10 + $0x10] sm:$0xff]  ;;  %v1396_v1 = vld [vmem:[%s1386_s10] sm:$0xff]  ;;  %s1859_s7 = scalar_lea.vmem [#allocation5], %s1001_s8  ;;  %s999_s11 = smul.u32 3072, %s1303_s16 }
  0x3d   : > { %219 = vadd.xlane.f32.xlu1 %v1393_v0  ;;  %215 = vadd.xlane.f32.xlu0 %v1396_v1  ;;  %v1401_v2 = vld [vmem:[%s1386_s10 + $0x18] sm:$0xff]  ;;  %v1404_v3 = vld [vmem:[%s1386_s10 + $0x8] sm:$0xff]  ;;  %v1412_v5 = vld [vmem:[%s1386_s10 + $0x20] sm:$0xff]  ;;  %v263_v25 = vmul.f32 %v1396_v1, %v1396_v1  ;;  %v265_v27 = vmul.f32 %v1393_v0, %v1393_v0  ;;  %s915_s17 = sshll.u32 %s1859_s7, 4  ;;  %s902_s26 = scalar_lea.sflag [#allocation4], %s1380_s5  ;;  %s2195_s17 = int_to_ptr.vmem [resolvable:$true] %s915_s17 }
  0x3e   : > { %v1409_v4 = vld [vmem:[%s1386_s10 + $0x28] sm:$0xff]  ;;  %v1417_v6 = vld [vmem:[%s1386_s10 + $0x38] sm:$0xff]  ;;  %v1420_v7 = vld [vmem:[%s1386_s10 + $0x30] sm:$0xff]  ;;  %v264_v24 = vmul.f32 %v1404_v3, %v1404_v3  ;;  %v266_v26 = vmul.f32 %v1401_v2, %v1401_v2  ;;  %v267_v29 = vmul.f32 %v1412_v5, %v1412_v5  ;;  %s2192_s25 = scalar_lea.hbm %s2243_s3, %s999_s11  ;;  %s1188_s27 = scalar_lea.vmem %s2195_s17, 3072 }
  0x3f   : > { %v1425_v8 = vld [vmem:[%s1386_s10 + $0x48] sm:$0xff]  ;;  %v1428_v9 = vld [vmem:[%s1386_s10 + $0x40] sm:$0xff]  ;;  %v1433_v10 = vld [vmem:[%s1386_s10 + $0x58] sm:$0xff]  ;;  %v268_v28 = vmul.f32 %v1409_v4, %v1409_v4  ;;  %v270_v30 = vmul.f32 %v1417_v6, %v1417_v6  ;;  %v269_v31 = vmul.f32 %v1420_v7, %v1420_v7  ;;  %p1189_p6 = scmp.ne.s32.totalorder %s2195_s17, %s1188_s27  ;;  %p2310_p11 = scmp.ne.s32.totalorder %s2263_s23, 0 }
  0x40   : > { %2266 = vst [vmem:[#allocation8_spill] sm:$0xff] %v1433_v10  ;;  %v1436_v11 = vld [vmem:[%s1386_s10 + $0x50] sm:$0xff]  ;;  %v1441_v12 = vld [vmem:[%s1386_s10 + $0x68] sm:$0xff]  ;;  %v1444_v13 = vld [vmem:[%s1386_s10 + $0x60] sm:$0xff]  ;;  %v272_v32 = vmul.f32 %v1425_v8, %v1425_v8  ;;  %v271_v33 = vmul.f32 %v1428_v9, %v1428_v9  ;;  %v274_v34 = vmul.f32 %v1433_v10, %v1433_v10  ;;  %s1259_s16 = smov [#allocation5]  }
  0x41   : > { %221 = vadd.xlane.f32.xlu1 %v1401_v2  ;;  %217 = vadd.xlane.f32.xlu0 %v1404_v3  ;;  %2267 = vst [vmem:[#allocation9_spill] sm:$0xff] %v1436_v11  ;;  %2268 = vst [vmem:[#allocation10_spill] sm:$0xff] %v1441_v12  ;;  %v206_v14 = vld [vmem:[%s1386_s10 + $0x78] sm:$0xff]  ;;  %v205_v15 = vld [vmem:[%s1386_s10 + $0x70] sm:$0xff]  ;;  %v273_v35 = vmul.f32 %v1436_v11, %v1436_v11  ;;  %v276_v36 = vmul.f32 %v1441_v12, %v1441_v12  ;;  %p1190_p12 = pnand %p1189_p6, %p2310_p11  ;;  %s1192_s28 = sshll.u32 %s1259_s16, 4  ;;  %s1193_s28 = int_to_ptr.vmem [resolvable:$false] %s1192_s28 }
  0x42   : > { %2269 = vst [vmem:[#allocation11_spill] sm:$0xff] %v1444_v13  ;;  %v208_v16 = vld [vmem:[%s1386_s10 + $0x88] sm:$0xff]  ;;  %v207_v17 = vld [vmem:[%s1386_s10 + $0x80] sm:$0xff]  ;;  %v210_v18 = vld [vmem:[%s1386_s10 + $0x98] sm:$0xff]  ;;  %v275_v37 = vmul.f32 %v1444_v13, %v1444_v13  ;;  %v278_v38 = vmul.f32 %v206_v14, %v206_v14  ;;  %v277_v39 = vmul.f32 %v205_v15, %v205_v15  ;;  %s1194_s29 = scalar_lea.vmem %s1193_s28, 6144  ;;  %p1195_p8 = scmp.lt.s32.totalorder %s2195_s17, %s1193_s28 }
  0x43   : > { %v209_v19 = vld [vmem:[%s1386_s10 + $0x90] sm:$0xff]  ;;  %v212_v20 = vld [vmem:[%s1386_s10 + $0xa8] sm:$0xff]  ;;  %v211_v21 = vld [vmem:[%s1386_s10 + $0xa0] sm:$0xff]  ;;  %v280_v40 = vmul.f32 %v208_v16, %v208_v16  ;;  %v279_v41 = vmul.f32 %v207_v17, %v207_v17  ;;  %v282_v42 = vmul.f32 %v210_v18, %v210_v18  ;;  %p1191_p13 = pneg %p1190_p12  ;;  %p1196_p10 = scmp.lt.s32.totalorder %s1194_s29, %s1188_s27 }
  0x44   : > { %v214_v22 = vld [vmem:[%s1386_s10 + $0xb8] sm:$0xff]  ;;  %v213_v23 = vld [vmem:[%s1386_s10 + $0xb0] sm:$0xff]  ;;  %v281_v43 = vmul.f32 %v209_v19, %v209_v19  ;;  %v284_v44 = vmul.f32 %v212_v20, %v212_v20  ;;  %v283_v45 = vmul.f32 %v211_v21, %v211_v21 }
  0x45   : > { %225 = vadd.xlane.f32.xlu1 %v1409_v4  ;;  %223 = vadd.xlane.f32.xlu0 %v1412_v5  ;;  %v286_v46 = vmul.f32 %v214_v22, %v214_v22  ;;  %v285_v47 = vmul.f32 %v213_v23, %v213_v23  ;;  %p1197_p0 = por %p1196_p10, %p1195_p8 }
  0x47   : > { %p1198_p2 = pnand %p1197_p0, %p1191_p13 }
  0x49   : > { %229 = vadd.xlane.f32.xlu1 %v1417_v6  ;;  %227 = vadd.xlane.f32.xlu0 %v1420_v7 }
  0x4d   : > { %233 = vadd.xlane.f32.xlu1 %v1425_v8  ;;  %231 = vadd.xlane.f32.xlu0 %v1428_v9 }
  0x51   : > { %237 = vadd.xlane.f32.xlu1 %v1433_v10  ;;  %235 = vadd.xlane.f32.xlu0 %v1436_v11 }
  0x55   : > { %241 = vadd.xlane.f32.xlu1 %v1441_v12  ;;  %239 = vadd.xlane.f32.xlu0 %v1444_v13 }
  0x59   : > { %245 = vadd.xlane.f32.xlu1 %v206_v14  ;;  %243 = vadd.xlane.f32.xlu0 %v205_v15 }
  0x5d   : > { %249 = vadd.xlane.f32.xlu1 %v208_v16  ;;  %247 = vadd.xlane.f32.xlu0 %v207_v17 }
  0x61   : > { %253 = vadd.xlane.f32.xlu1 %v210_v18  ;;  %251 = vadd.xlane.f32.xlu0 %v209_v19 }
  0x65   : > { %257 = vadd.xlane.f32.xlu1 %v212_v20  ;;  %255 = vadd.xlane.f32.xlu0 %v211_v21 }
  0x69   : > { %261 = vadd.xlane.f32.xlu1 %v214_v22  ;;  %259 = vadd.xlane.f32.xlu0 %v213_v23 }
  0x6d   : > { %289 = vadd.xlane.f32.xlu1 %v264_v24  ;;  %287 = vadd.xlane.f32.xlu0 %v263_v25 }
  0x71   : > { %293 = vadd.xlane.f32.xlu1 %v266_v26  ;;  %291 = vadd.xlane.f32.xlu0 %v265_v27 }
  0x75   : > { %297 = vadd.xlane.f32.xlu1 %v268_v28  ;;  %295 = vadd.xlane.f32.xlu0 %v267_v29 }
  0x79   : > { %301 = vadd.xlane.f32.xlu1 %v270_v30  ;;  %299 = vadd.xlane.f32.xlu0 %v269_v31 }
  0x7d   : > { %305 = vadd.xlane.f32.xlu1 %v272_v32  ;;  %303 = vadd.xlane.f32.xlu0 %v271_v33 }
  0x81   : > { %309 = vadd.xlane.f32.xlu1 %v274_v34  ;;  %307 = vadd.xlane.f32.xlu0 %v273_v35 }
  0x85   : > { %313 = vadd.xlane.f32.xlu1 %v276_v36  ;;  %311 = vadd.xlane.f32.xlu0 %v275_v37 }
  0x89   : > { %317 = vadd.xlane.f32.xlu1 %v278_v38  ;;  %315 = vadd.xlane.f32.xlu0 %v277_v39 }
  0x8d   : > { %321 = vadd.xlane.f32.xlu1 %v280_v40  ;;  %319 = vadd.xlane.f32.xlu0 %v279_v41 }
  0x91   : > { %325 = vadd.xlane.f32.xlu1 %v282_v42  ;;  %323 = vadd.xlane.f32.xlu0 %v281_v43 }
  0x95   : > { %329 = vadd.xlane.f32.xlu1 %v284_v44  ;;  %327 = vadd.xlane.f32.xlu0 %v283_v45 }
  0x99   : > { %333 = vadd.xlane.f32.xlu1 %v286_v46  ;;  %331 = vadd.xlane.f32.xlu0 %v285_v47 }
  0xca   : > { %v220_v48 = vpop.xlane.xlu1 %219  ;;  %v216_v49 = vpop.xlane.xlu0 %215 }
  0xcb   : > { %v1490_v16 = vmul.f32 0.0078125, %v220_v48  ;;  %v1492_v17 = vmul.f32 0.0078125, %v216_v49 }
  0xcd   : > { %v359_v24 = vmul.f32 128.0, %v1492_v17  ;;  %v361_v25 = vmul.f32 128.0, %v1490_v16 }
  0xce   : > { %v222_v50 = vpop.xlane.xlu1 %221  ;;  %v218_v51 = vpop.xlane.xlu0 %217 }
  0xcf   : > { %v1494_v18 = vmul.f32 0.0078125, %v222_v50  ;;  %v1496_v19 = vmul.f32 0.0078125, %v218_v51  ;;  %v383_v40 = vmul.f32 %v359_v24, %v1492_v17  ;;  %v1532_v41 = vmul.f32 %v361_v25, %v1490_v16 }
  0xd1   : > { %v360_v32 = vmul.f32 128.0, %v1496_v19  ;;  %v362_v33 = vmul.f32 128.0, %v1494_v18 }
  0xd2   : > { %v226_v52 = vpop.xlane.xlu1 %225  ;;  %v224_v53 = vpop.xlane.xlu0 %223 }
  0xd3   : > { %v1502_v22 = vmul.f32 0.0078125, %v226_v52  ;;  %v1504_v23 = vmul.f32 0.0078125, %v224_v53  ;;  %v384_v48 = vmul.f32 %v360_v32, %v1496_v19  ;;  %v386_v49 = vmul.f32 %v362_v33, %v1494_v18 }
  0xd5   : > { %v364_v36 = vmul.f32 128.0, %v1502_v22  ;;  %v363_v37 = vmul.f32 128.0, %v1504_v23 }
  0xd6   : > { %v230_v54 = vpop.xlane.xlu1 %229  ;;  %v228_v55 = vpop.xlane.xlu0 %227 }
  0xd7   : > { %v1508_v26 = vmul.f32 0.0078125, %v230_v54  ;;  %v1510_v27 = vmul.f32 0.0078125, %v228_v55  ;;  %v388_v54 = vmul.f32 %v364_v36, %v1502_v22  ;;  %v387_v55 = vmul.f32 %v363_v37, %v1504_v23 }
  0xd9   : > { %v366_v44 = vmul.f32 128.0, %v1508_v26  ;;  %v365_v45 = vmul.f32 128.0, %v1510_v27 }
  0xda   : > { %v234_v56 = vpop.xlane.xlu1 %233  ;;  %v232_v57 = vpop.xlane.xlu0 %231 }
  0xdb   : > { %v1512_v28 = vmul.f32 0.0078125, %v234_v56  ;;  %v1514_v29 = vmul.f32 0.0078125, %v232_v57  ;;  %v1565_v32 = vmul.f32 %v366_v44, %v1508_v26  ;;  %v1568_v33 = vmul.f32 %v365_v45, %v1510_v27 }
  0xdd   : > { %2270 = vst [vmem:[#allocation12_spill] sm:$0xff] %v1514_v29  ;;  %v368_v50 = vmul.f32 128.0, %v1512_v28  ;;  %v367_v51 = vmul.f32 128.0, %v1514_v29 }
  0xde   : > { %v238_v58 = vpop.xlane.xlu1 %237  ;;  %v236_v59 = vpop.xlane.xlu0 %235 }
  0xdf   : > { %v1526_v38 = vmul.f32 0.0078125, %v238_v58  ;;  %v1528_v39 = vmul.f32 0.0078125, %v236_v59  ;;  %v1575_v53 = vmul.f32 %v368_v50, %v1512_v28  ;;  %v1578_v24 = vmul.f32 %v367_v51, %v1514_v29 }
  0xe1   : > { %2271 = vst [vmem:[#allocation13_spill] sm:$0xff] %v1526_v38  ;;  %2272 = vst [vmem:[#allocation14_spill] sm:$0xff] %v1528_v39  ;;  %v370_v58 = vmul.f32 128.0, %v1526_v38  ;;  %v369_v59 = vmul.f32 128.0, %v1528_v39 }
  0xe2   : > { %v242_v60 = vpop.xlane.xlu1 %241  ;;  %v240_v61 = vpop.xlane.xlu0 %239 }
  0xe3   : > { %v1570_v36 = vmul.f32 0.0078125, %v242_v60  ;;  %v1572_v37 = vmul.f32 0.0078125, %v240_v61  ;;  %v1589_v34 = vmul.f32 %v370_v58, %v1526_v38  ;;  %v1592_v50 = vmul.f32 %v369_v59, %v1528_v39 }
  0xe5   : > { %2273 = vst [vmem:[#allocation15_spill] sm:$0xff] %v1570_v36  ;;  %2274 = vst [vmem:[#allocation16_spill] sm:$0xff] %v1572_v37 }
  0xe6   : > { %v246_v62 = vpop.xlane.xlu1 %245  ;;  %v244_v63 = vpop.xlane.xlu0 %243 }
  0xe7   : > { %v1584_v60 = vmul.f32 0.0078125, %v246_v62  ;;  %v1586_v61 = vmul.f32 0.0078125, %v244_v63  ;;  %v371_v63 = vmul.f32 128.0, %v1572_v37 }
  0xe9   : > { %2275 = vst [vmem:[#allocation17_spill] sm:$0xff] %v1586_v61 }
  0xea   : > { %v1486_v14 = vpop.xlane.xlu1 %249  ;;  %v1488_v15 = vpop.xlane.xlu0 %247 }
  0xeb   : > { %v1595_v51 = vmul.f32 0.0078125, %v1486_v14  ;;  %v1598_v25 = vmul.f32 0.0078125, %v1488_v15 }
  0xed   : > { %2276 = vst [vmem:[#allocation18_spill] sm:$0xff] %v1595_v51  ;;  %2277 = vst [vmem:[#allocation19_spill] sm:$0xff] %v1598_v25 }
  0xee   : > { %v1498_v20 = vpop.xlane.xlu1 %253  ;;  %v1500_v21 = vpop.xlane.xlu0 %251 }
  0xf2   : > { %v258_v30 = vpop.xlane.xlu1 %257  ;;  %v1516_v31 = vpop.xlane.xlu0 %255 }
  0xf3   : > { %v1615_v59 = vmul.f32 0.0078125, %v258_v30 }
  0xf5   : > { %2280 = vst [vmem:[#allocation22_spill] sm:$0xff] %v1615_v59  ;;  %v380_v11 = vmul.f32 128.0, %v1615_v59 }
  0xf6   : > { %v1540_v46 = vpop.xlane.xlu1 %261  ;;  %v1542_v47 = vpop.xlane.xlu0 %259 }
  0xf7   : > { %v1631_v12 = vmul.f32 0.0078125, %v1540_v46 }
  0xfa   : > { %v290_v57 = vpop.xlane.xlu1 %289  ;;  %v288_v56 = vpop.xlane.xlu0 %287 }
  0xfb   : > { %v408_v45 = vsub.f32 %v290_v57, %v384_v48  ;;  %v407_v52 = vsub.f32 %v288_v56, %v383_v40  ;;  %v1605_v40 = vmul.f32 0.0078125, %v1498_v20  ;;  %v1608_v48 = vmul.f32 0.0078125, %v1500_v21 }
  0xfc   : > { %v374_v20 = vmul.f32 128.0, %v1584_v60  ;;  %v373_v21 = vmul.f32 128.0, %v1586_v61 }
  0xfd   : > { %v432_v42 = vmax.f32 %v408_v45, 0.0  ;;  %v431_v44 = vmax.f32 %v407_v52, 0.0  ;;  %2278 = vst [vmem:[#allocation20_spill] sm:$0xff] %v1605_v40  ;;  %2279 = vst [vmem:[#allocation21_spill] sm:$0xff] %v1608_v48  ;;  %v372_v45 = vmul.f32 128.0, %v1570_v36 }
  0xfe   : > { %v294_v56 = vpop.xlane.xlu1 %293  ;;  %v292_v14 = vpop.xlane.xlu0 %291  ;;  %v1648_v46 = vmul.f32 %v373_v21, %v1586_v61  ;;  %v1674_v21 = vmul.f32 128.0, %v1631_v12 }
  0xff   : > { %v1610_v57 = vmul.f32 0.007874016, %v432_v42  ;;  %v1612_v15 = vmul.f32 0.007874016, %v431_v44  ;;  %v410_v58 = vsub.f32 %v294_v56, %v386_v49  ;;  %v409_v52 = vsub.f32 %v292_v14, %v1532_v41 }
 0x100   : > { %v376_v42 = vmul.f32 128.0, %v1595_v51  ;;  %v375_v44 = vmul.f32 128.0, %v1598_v25  ;;  %v1625_v49 = vmul.f32 0.0078125, %v1516_v31  ;;  %v378_v56 = vmul.f32 128.0, %v1605_v40 }
 0x101   : > { %1052 = vrsqrt.f32 %v1610_v57  ;;  %v377_v14 = vmul.f32 128.0, %v1608_v48  ;;  %v434_v62 = vmax.f32 %v410_v58, 0.0  ;;  %v433_v35 = vmax.f32 %v409_v52, 0.0 }
 0x102   : > { %1054 = vrsqrt.f32 %v1612_v15  ;;  %v298_v30 = vpop.xlane.xlu1 %297  ;;  %v296_v41 = vpop.xlane.xlu0 %295  ;;  %v1634_v39 = vmul.f32 %v372_v45, %v1570_v36  ;;  %v1637_v31 = vmul.f32 %v371_v63, %v1572_v37  ;;  %v1651_v45 = vmul.f32 %v376_v42, %v1595_v51 }
 0x103   : > { %v412_v43 = vsub.f32 %v298_v30, %v388_v54  ;;  %v411_v13 = vsub.f32 %v296_v41, %v387_v55  ;;  %v1640_v38 = vmul.f32 0.007874016, %v434_v62  ;;  %v1642_v10 = vmul.f32 0.007874016, %v433_v35 }
 0x104   : > { %v1645_v55 = vmul.f32 %v374_v20, %v1584_v60  ;;  %v1654_v63 = vmul.f32 %v375_v44, %v1598_v25  ;;  %v1658_v35 = vmul.f32 %v378_v56, %v1605_v40  ;;  %v1667_v62 = vmul.f32 0.0078125, %v1542_v47 }
 0x105   : > { %v436_v29 = vmax.f32 %v412_v43, 0.0  ;;  %v435_v58 = vmax.f32 %v411_v13, 0.0  ;;  %1056 = vrsqrt.f32 %v1640_v38  ;;  %v1661_v13 = vmul.f32 %v377_v14, %v1608_v48 }
 0x106   : > { %v302_v52 = vpop.xlane.xlu1 %301  ;;  %v300_v54 = vpop.xlane.xlu0 %299  ;;  %v1664_v43 = vmul.f32 128.0, %v1625_v49  ;;  %1058 = vrsqrt.f32 %v1642_v10  ;;  %v1671_v20 = vmul.f32 %v380_v11, %v1615_v59  ;;  %vm488_vm0 = vcmp.eq.f32.partialorder %v1610_v57, inf }
 0x107   : > { %v1676_v42 = vmul.f32 0.007874016, %v436_v29  ;;  %v1678_v44 = vmul.f32 0.007874016, %v435_v58  ;;  %v414_v30 = vsub.f32 %v302_v52, %v1565_v32  ;;  %v413_v41 = vsub.f32 %v300_v54, %v1568_v33 }
 0x108   : > { %vm490_vm1 = vcmp.eq.f32.partialorder %v1610_v57, 0.0  ;;  %v491_v47 = vand.u32 2147483648, %v1610_v57  ;;  %vm481_vm2 = vcmp.eq.f32.partialorder %v1612_v15, inf  ;;  %vm483_vm3 = vcmp.eq.f32.partialorder %v1612_v15, 0.0 }
 0x109   : > { %v484_v29 = vand.u32 2147483648, %v1612_v15  ;;  %vm502_vm4 = vcmp.eq.f32.partialorder %v1640_v38, inf  ;;  %1060 = vrsqrt.f32 %v1676_v42  ;;  %vm504_vm5 = vcmp.eq.f32.partialorder %v1640_v38, 0.0 }
 0x10a   : > { %v306_v32 = vpop.xlane.xlu1 %305  ;;  %v304_v56 = vpop.xlane.xlu0 %303  ;;  %v505_v58 = vand.u32 2147483648, %v1640_v38  ;;  %1062 = vrsqrt.f32 %v1678_v44  ;;  %vm495_vm6 = vcmp.eq.f32.partialorder %v1642_v10, inf  ;;  %v438_v54 = vmax.f32 %v414_v30, 0.0 }
 0x10b   : > { %v1053_v11 = vpop.eup %1052  ;;  %v437_v59 = vmax.f32 %v413_v41, 0.0  ;;  %vm497_vm7 = vcmp.eq.f32.partialorder %v1642_v10, 0.0  ;;  %v415_v40 = vsub.f32 %v304_v56, %v1578_v24  ;;  %v498_v30 = vand.u32 2147483648, %v1642_v10 }
 0x10c   : > { %v1055_v33 = vpop.eup %1054  ;;  %v487_v14 = vmul.f32 %v1053_v11, %v1610_v57  ;;  %v416_v11 = vsub.f32 %v306_v32, %v1575_v53  ;;  %v1708_v41 = vmul.f32 0.007874016, %v438_v54  ;;  %vm516_vm8 = vcmp.eq.f32.partialorder %v1676_v42, inf }
 0x10d   : > { %v480_v52 = vmul.f32 %v1055_v33, %v1612_v15  ;;  %v1714_v51 = vmul.f32 0.007874016, %v437_v59  ;;  %vm518_vm9 = vcmp.eq.f32.partialorder %v1676_v42, 0.0  ;;  %vm509_vm10 = vcmp.eq.f32.partialorder %v1678_v44, inf }
 0x10e   : > { %v489_v48 = vsel %vm488_vm0, %v1610_v57, %v487_v14  ;;  %v440_v53 = vmax.f32 %v416_v11, 0.0  ;;  %1064 = vrsqrt.f32 %v1708_v41  ;;  %v310_v57 = vpop.xlane.xlu1 %309  ;;  %vm511_vm11 = vcmp.eq.f32.partialorder %v1678_v44, 0.0 }
 0x10f   : > { %v492_v25 = vsel %vm490_vm1, %v491_v47, %v489_v48  ;;  %v482_v33 = vsel %vm481_vm2, %v1612_v15, %v480_v52  ;;  %v1057_v24 = vpop.eup %1056  ;;  %v439_v48 = vmax.f32 %v415_v40, 0.0  ;;  %v519_v15 = vand.u32 2147483648, %v1676_v42 }
 0x110   : > { %v1710_v37 = vadd.f32 1e-06, %v492_v25  ;;  %v485_v14 = vsel %vm483_vm3, %v484_v29, %v482_v33  ;;  %v1059_v47 = vpop.eup %1058  ;;  %v501_v25 = vmul.f32 %v1057_v24, %v1640_v38  ;;  %v512_v29 = vand.u32 2147483648, %v1678_v44 }
 0x111   : > { %v1716_v32 = vadd.f32 1e-06, %v485_v14  ;;  %v494_v59 = vmul.f32 %v1059_v47, %v1642_v10  ;;  %v1733_v56 = vmul.f32 0.007874016, %v440_v53  ;;  %vm530_vm12 = vcmp.eq.f32.partialorder %v1708_v41, inf  ;;  %v308_v14 = vpop.xlane.xlu0 %307 }
 0x112   : > { %1066 = vrcp.f32 %v1710_v37  ;;  %v503_v40 = vsel %vm502_vm4, %v1640_v38, %v501_v25  ;;  %v1741_v33 = vmul.f32 0.007874016, %v439_v48  ;;  %vm532_vm13 = vcmp.eq.f32.partialorder %v1708_v41, 0.0 }
 0x113   : > { %1068 = vrcp.f32 %v1716_v32  ;;  %v1061_v52 = vpop.eup %1060  ;;  %v506_v54 = vsel %vm504_vm5, %v505_v58, %v503_v40  ;;  %v496_v11 = vsel %vm495_vm6, %v1642_v10, %v494_v59  ;;  %v533_v48 = vand.u32 2147483648, %v1708_v41  ;;  %v314_v40 = vpop.xlane.xlu1 %313 }
 0x114   : > { %1070 = vrsqrt.f32 %v1714_v51  ;;  %v1063_v24 = vpop.eup %1062  ;;  %v1743_v47 = vadd.f32 1e-06, %v506_v54  ;;  %v499_v53 = vsel %vm497_vm7, %v498_v30, %v496_v11  ;;  %v515_v25 = vmul.f32 %v1061_v52, %v1676_v42 }
 0x115   : > { %1072 = vrsqrt.f32 %v1733_v56  ;;  %v1750_v38 = vadd.f32 1e-06, %v499_v53  ;;  %v508_v58 = vmul.f32 %v1063_v24, %v1678_v44  ;;  %v418_v59 = vsub.f32 %v310_v57, %v1589_v34 }
 0x116   : > { %1074 = vrcp.f32 %v1743_v47  ;;  %v517_v10 = vsel %vm516_vm8, %v1676_v42, %v515_v25  ;;  %vm523_vm14 = vcmp.eq.f32.partialorder %v1714_v51, inf  ;;  %v417_v30 = vsub.f32 %v308_v14, %v1592_v50 }
 0x117   : > { %1076 = vrcp.f32 %v1750_v38  ;;  %v520_v52 = vsel %vm518_vm9, %v519_v15, %v517_v10  ;;  %v510_v34 = vsel %vm509_vm10, %v1678_v44, %v508_v58  ;;  %vm525_vm15 = vcmp.eq.f32.partialorder %v1714_v51, 0.0  ;;  %v312_v15 = vpop.xlane.xlu0 %311 }
 0x118   : > { %v1768_v57 = vadd.f32 1e-06, %v520_v52  ;;  %v513_v54 = vsel %vm511_vm11, %v512_v29, %v510_v34  ;;  %v526_v11 = vand.u32 2147483648, %v1714_v51  ;;  %1078 = vrsqrt.f32 %v1741_v33  ;;  %v1065_v50 = vpop.eup %1064  ;;  %v1786_v34 = vpop.xlane.xlu1 %317 }
 0x119   : > { %v1774_v14 = vadd.f32 1e-06, %v513_v54  ;;  %vm544_vm0 = vcmp.eq.f32.partialorder %v1733_v56, inf  ;;  %vm546_vm1 = vcmp.eq.f32.partialorder %v1733_v56, 0.0  ;;  %v442_v42 = vmax.f32 %v418_v59, 0.0 }
 0x11a   : > { %1080 = vrcp.f32 %v1768_v57  ;;  %v529_v53 = vmul.f32 %v1065_v50, %v1708_v41  ;;  %v547_v44 = vand.u32 2147483648, %v1733_v56  ;;  %v441_v29 = vmax.f32 %v417_v30, 0.0 }
 0x11b   : > { %1082 = vrcp.f32 %v1774_v14  ;;  %v1783_v10 = vmul.f32 0.007874016, %v442_v42  ;;  %v420_v52 = vsub.f32 %v314_v40, %v1634_v39  ;;  %v540_v30 = vand.u32 2147483648, %v1741_v33 }
 0x11c   : > { %v1067_v24 = vpop.eup %1066  ;;  %v531_v50 = vsel %vm530_vm12, %v1708_v41, %v529_v53  ;;  %v419_v36 = vsub.f32 %v312_v15, %v1637_v31  ;;  %vm537_vm2 = vcmp.eq.f32.partialorder %v1741_v33, inf  ;;  %vm539_vm3 = vcmp.eq.f32.partialorder %v1741_v33, 0.0 }
 0x11d   : > { %v1069_v25 = vpop.eup %1068  ;;  %v696_v58 = vmul.f32 %v1067_v24, %v1710_v37  ;;  %v534_v42 = vsel %vm532_vm13, %v533_v48, %v531_v50  ;;  %1084 = vrsqrt.f32 %v1783_v10  ;;  %v1802_v53 = vmul.f32 0.007874016, %v441_v29 }
 0x11e   : > { %v1071_v59 = vpop.eup %1070  ;;  %v695_v54 = vmul.f32 %v1069_v25, %v1716_v32  ;;  %v1799_v40 = vadd.f32 1e-06, %v534_v42  ;;  %v422_v31 = vsub.f32 %v1786_v34, %v1645_v55  ;;  %vm558_vm4 = vcmp.eq.f32.partialorder %v1783_v10, inf }
 0x11f   : > { %v720_v37 = vsub.f32 2.0, %v696_v58  ;;  %v522_v61 = vmul.f32 %v1071_v59, %v1714_v51  ;;  %v1073_v39 = vpop.eup %1072  ;;  %v444_v58 = vmax.f32 %v420_v52, 0.0  ;;  %vm560_vm5 = vcmp.eq.f32.partialorder %v1783_v10, 0.0 }
 0x120   : > { %v719_v32 = vsub.f32 2.0, %v695_v54  ;;  %v543_v48 = vmul.f32 %v1073_v39, %v1733_v56  ;;  %v1075_v59 = vpop.eup %1074  ;;  %v1813_v54 = vld [vmem:[%s2241_s1] ss:$0 sm:$0xff]  ;;  %1086 = vrcp.f32 %v1799_v40  ;;  %vm551_vm6 = vcmp.eq.f32.partialorder %v1802_v53, inf }
 0x121   : > { %v744_v15 = vmul.f32 %v1067_v24, %v720_v37  ;;  %v524_v41 = vsel %vm523_vm14, %v1714_v51, %v522_v61  ;;  %v1818_v24 = vmax.f32 %v419_v36, 0.0  ;;  %v1077_v37 = vpop.eup %1076  ;;  %v2281_v61 = vsub.f32 %v1404_v3, %v1496_v19  ;;  %v1833_v36 = vld [vmem:[%s2242_s2] ss:$0 sm:$0xff] }
 0x122   : > { %v743_v50 = vmul.f32 %v1069_v25, %v719_v32  ;;  %v527_v29 = vsel %vm525_vm15, %v526_v11, %v524_v41  ;;  %v698_v52 = vmul.f32 %v1075_v59, %v1743_v47  ;;  %v545_v25 = vsel %vm544_vm0, %v1733_v56, %v543_v48  ;;  %v1079_v32 = vpop.eup %1078 }
 0x123   : > { %v792_v42 = vmul.f32 %v2281_v61, %v744_v15  ;;  %v1824_v39 = vadd.f32 1e-06, %v527_v29  ;;  %v2282_v3 = vsub.f32 %v1396_v1, %v1492_v17  ;;  %v697_v51 = vmul.f32 %v1077_v37, %v1750_v38 }
 0x124   : > { %v548_v47 = vsel %vm546_vm1, %v547_v44, %v545_v25  ;;  %1088 = vrsqrt.f32 %v1802_v53  ;;  %v722_v15 = vsub.f32 2.0, %v698_v52  ;;  %v1081_v48 = vpop.eup %1080  ;;  %v536_v17 = vmul.f32 %v1079_v32, %v1741_v33 }
 0x125   : > { %v791_v19 = vmul.f32 %v2282_v3, %v743_v50  ;;  %v823_v11 = vmul.f32 %v1813_v54, %v792_v42  ;;  %1090 = vrcp.f32 %v1824_v39  ;;  %v1844_v41 = vadd.f32 1e-06, %v548_v47  ;;  %v1083_v56 = vpop.eup %1082 }
 0x126   : > { %v721_v1 = vsub.f32 2.0, %v697_v51  ;;  %v746_v44 = vmul.f32 %v1075_v59, %v722_v15  ;;  %v700_v50 = vmul.f32 %v1081_v48, %v1768_v57  ;;  %v699_v52 = vmul.f32 %v1083_v56, %v1774_v14 }
 0x127   : > { %v822_v29 = vmul.f32 %v1813_v54, %v791_v19  ;;  %v854_v38 = vadd.f32 %v1833_v36, %v823_v11  ;;  %1092 = vrcp.f32 %v1844_v41  ;;  %v538_v25 = vsel %vm537_vm2, %v1741_v33, %v536_v17  ;;  %v1085_v32 = vpop.eup %1084 }
 0x128   : > { %v745_v42 = vmul.f32 %v1077_v37, %v721_v1  ;;  %v2283_v57 = vsub.f32 %v1401_v2, %v1494_v18  ;;  %v724_v3 = vsub.f32 2.0, %v700_v50  ;;  %v541_v37 = vsel %vm539_vm3, %v540_v30, %v538_v25 }
 0x129   : > { %v853_v61 = vadd.f32 %v1833_v36, %v822_v29  ;;  %878 = vst [vmem:[%s1859_s7 + $0x8] sm:$0xff] %v854_v38  ;;  %v561_v14 = vand.u32 2147483648, %v1783_v10  ;;  %v2284_v19 = vsub.f32 %v1393_v0, %v1490_v16  ;;  %v723_v47 = vsub.f32 2.0, %v699_v52 }
 0x12a   : > { %v794_v59 = vmul.f32 %v2283_v57, %v746_v44  ;;  %v1872_v11 = vadd.f32 1e-06, %v541_v37  ;;  %v557_v15 = vmul.f32 %v1085_v32, %v1783_v10  ;;  %v748_v2 = vmul.f32 %v1081_v48, %v724_v3  ;;  %v1087_v33 = vpop.eup %1086  ;;  %v316_v44 = vpop.xlane.xlu0 %315 }
 0x12b   : > { %877 = vst [vmem:[%s1859_s7] sm:$0xff] %v853_v61  ;;  %v793_v51 = vmul.f32 %v2284_v19, %v745_v42  ;;  %v1877_v18 = vmul.f32 0.007874016, %v444_v58  ;;  %v747_v1 = vmul.f32 %v1083_v56, %v723_v47  ;;  %v2285_v48 = vsub.f32 %v1409_v4, %v1502_v22 }
 0x12c   : > { %v825_v29 = vmul.f32 %v1813_v54, %v794_v59  ;;  %1094 = vrcp.f32 %v1872_v11  ;;  %v559_v0 = vsel %vm558_vm4, %v1783_v10, %v557_v15  ;;  %v702_v58 = vmul.f32 %v1087_v33, %v1799_v40 }
 0x12d   : > { %v824_v30 = vmul.f32 %v1813_v54, %v793_v51  ;;  %v796_v17 = vmul.f32 %v2285_v48, %v748_v2  ;;  %v562_v38 = vsel %vm560_vm5, %v561_v14, %v559_v0  ;;  %v2286_v61 = vsub.f32 %v1412_v5, %v1504_v23 }
 0x12e   : > { %v856_v16 = vadd.f32 %v1833_v36, %v825_v29  ;;  %v1089_v56 = vpop.eup %1088  ;;  %v1895_v52 = vadd.f32 1e-06, %v562_v38  ;;  %1096 = vrsqrt.f32 %v1877_v18  ;;  %v726_v40 = vsub.f32 2.0, %v702_v58  ;;  %v322_v29 = vpop.xlane.xlu1 %321 }
 0x12f   : > { %v855_v50 = vadd.f32 %v1833_v36, %v824_v30  ;;  %v795_v42 = vmul.f32 %v2286_v61, %v747_v1  ;;  %v1091_v4 = vpop.eup %1090  ;;  %v827_v22 = vmul.f32 %v1813_v54, %v796_v17  ;;  %v550_v10 = vmul.f32 %v1089_v56, %v1802_v53  ;;  %v320_v2 = vpop.xlane.xlu0 %319 }
 0x130   : > { %880 = vst [vmem:[%s1859_s7 + $0x18] sm:$0xff] %v856_v16  ;;  %v1902_v25 = vmul.f32 0.007874016, %v1818_v24  ;;  %v701_v5 = vmul.f32 %v1091_v4, %v1824_v39  ;;  %1098 = vrcp.f32 %v1895_v52  ;;  %v554_v23 = vand.u32 2147483648, %v1802_v53 }
 0x131   : > { %879 = vst [vmem:[%s1859_s7 + $0x10] sm:$0xff] %v855_v50  ;;  %v826_v32 = vmul.f32 %v1813_v54, %v795_v42  ;;  %v1093_v57 = vpop.eup %1092  ;;  %v858_v59 = vadd.f32 %v1833_v36, %v827_v22  ;;  %v750_v3 = vmul.f32 %v1087_v33, %v726_v40  ;;  %v552_v37 = vsel %vm551_vm6, %v1802_v53, %v550_v10 }
 0x132   : > { %vm553_vm7 = vcmp.eq.f32.partialorder %v1802_v53, 0.0  ;;  %v725_v14 = vsub.f32 2.0, %v701_v5  ;;  %v704_v39 = vmul.f32 %v1093_v57, %v1844_v41  ;;  %v2287_v51 = vsub.f32 %v1417_v6, %v1508_v26  ;;  %v326_v42 = vpop.xlane.xlu1 %325 }
 0x133   : > { %v857_v24 = vadd.f32 %v1833_v36, %v826_v32  ;;  %v555_v19 = vsel %vm553_vm7, %v554_v23, %v552_v37  ;;  %882 = vst [vmem:[%s1859_s7 + $0x28] sm:$0xff] %v858_v59  ;;  %1100 = vrsqrt.f32 %v1902_v25  ;;  %v1925_v53 = vmul.f32 %v1664_v43, %v1625_v49 }
 0x134   : > { %v798_v47 = vmul.f32 %v2287_v51, %v750_v3  ;;  %v1920_v15 = vadd.f32 1e-06, %v555_v19  ;;  %v749_v33 = vmul.f32 %v1091_v4, %v725_v14  ;;  %v728_v30 = vsub.f32 2.0, %v704_v39  ;;  %v2290_v3 = vld [vmem:[#allocation12_spill] sm:$0xff] }
 0x135   : > { %881 = vst [vmem:[%s1859_s7 + $0x20] sm:$0xff] %v857_v24  ;;  %v1930_v41 = vmul.f32 %v1674_v21, %v1631_v12  ;;  %v1933_v6 = vmul.f32 128.0, %v1667_v62  ;;  %v446_v1 = vmax.f32 %v422_v31, 0.0  ;;  %v421_v43 = vsub.f32 %v316_v44, %v1648_v46 }
 0x136   : > { %v829_v26 = vmul.f32 %v1813_v54, %v798_v47  ;;  %1102 = vrcp.f32 %v1920_v15  ;;  %v1095_v0 = vpop.eup %1094  ;;  %v2288_v16 = vsub.f32 %v1420_v7, %v1510_v27  ;;  %v752_v48 = vmul.f32 %v1093_v57, %v728_v30  ;;  %v324_v57 = vpop.xlane.xlu0 %323 }
 0x137   : > { %v424_v17 = vsub.f32 %v322_v29, %v1651_v45  ;;  %v423_v58 = vsub.f32 %v320_v2, %v1654_v63  ;;  %v703_v56 = vmul.f32 %v1095_v0, %v1872_v11  ;;  %v1948_v50 = vmul.f32 0.007874016, %v446_v1  ;;  %v2293_v1 = vld [vmem:[#allocation13_spill] sm:$0xff] }
 0x138   : > { %v797_v21 = vmul.f32 %v2288_v16, %v749_v33  ;;  %v860_v38 = vadd.f32 %v1833_v36, %v829_v26  ;;  %v445_v55 = vmax.f32 %v421_v43, 0.0  ;;  %v1097_v34 = vpop.eup %1096  ;;  %v2289_v31 = vsub.f32 %v1425_v8, %v1512_v28  ;;  %v330_v33 = vpop.xlane.xlu1 %329  ;;  %v2292_v26 = vld [vmem:[#allocation8_spill] sm:$0xff] }
 0x139   : > { %vm572_vm8 = vcmp.eq.f32.partialorder %v1877_v18, inf  ;;  %v448_v27 = vmax.f32 %v424_v17, 0.0  ;;  %v727_v45 = vsub.f32 2.0, %v703_v56  ;;  %v571_v63 = vmul.f32 %v1097_v34, %v1877_v18 }
 0x13a   : > { %v828_v46 = vmul.f32 %v1813_v54, %v797_v21  ;;  %v800_v7 = vmul.f32 %v2289_v31, %v752_v48  ;;  %884 = vst [vmem:[%s1859_s7 + $0x38] sm:$0xff] %v860_v38  ;;  %vm574_vm9 = vcmp.eq.f32.partialorder %v1877_v18, 0.0  ;;  %1104 = vrsqrt.f32 %v1948_v50  ;;  %v1099_v11 = vpop.eup %1098 }
 0x13b   : > { %v575_v8 = vand.u32 2147483648, %v1877_v18  ;;  %v447_v28 = vmax.f32 %v423_v58, 0.0  ;;  %v751_v4 = vmul.f32 %v1095_v0, %v727_v45  ;;  %v706_v22 = vmul.f32 %v1099_v11, %v1895_v52 }
 0x13c   : > { %v859_v44 = vadd.f32 %v1833_v36, %v828_v46  ;;  %v831_v61 = vmul.f32 %v1813_v54, %v800_v7  ;;  %v573_v40 = vsel %vm572_vm8, %v1877_v18, %v571_v63  ;;  %v1964_v10 = vmul.f32 0.007874016, %v445_v55  ;;  %v2295_v63 = vld [vmem:[#allocation9_spill] sm:$0xff] }
 0x13d   : > { %v576_v5 = vsel %vm574_vm9, %v575_v8, %v573_v40  ;;  %vm565_vm10 = vcmp.eq.f32.partialorder %v1902_v25, inf  ;;  %v1969_v23 = vmul.f32 0.007874016, %v448_v27  ;;  %v1101_v59 = vpop.eup %1100  ;;  %v2291_v37 = vsub.f32 %v1428_v9, %v2290_v3 }
 0x13e   : > { %883 = vst [vmem:[%s1859_s7 + $0x30] sm:$0xff] %v859_v44  ;;  %v862_v32 = vadd.f32 %v1833_v36, %v831_v61  ;;  %v730_v14 = vsub.f32 2.0, %v706_v22  ;;  %v660_v52 = vadd.f32 1e-06, %v576_v5  ;;  %1106 = vrsqrt.f32 %v1964_v10 }
 0x13f   : > { %v799_v24 = vmul.f32 %v2291_v37, %v751_v4  ;;  %v564_v18 = vmul.f32 %v1101_v59, %v1902_v25  ;;  %vm567_vm11 = vcmp.eq.f32.partialorder %v1902_v25, 0.0  ;;  %v568_v39 = vand.u32 2147483648, %v1902_v25 }
 0x140   : > { %886 = vst [vmem:[%s1859_s7 + $0x48] sm:$0xff] %v862_v32  ;;  %v1979_v19 = vmul.f32 0.007874016, %v447_v28  ;;  %v1103_v51 = vpop.eup %1102  ;;  %v754_v29 = vmul.f32 %v1099_v11, %v730_v14  ;;  %1108 = vrcp.f32 %v660_v52  ;;  %vm586_vm12 = vcmp.eq.f32.partialorder %v1948_v50, inf  ;;  %v2296_v11 = vld [vmem:[#allocation14_spill] sm:$0xff]  ;;  %v334_v28 = vpop.xlane.xlu1 %333 }
 0x141   : > { %v830_v47 = vmul.f32 %v1813_v54, %v799_v24  ;;  %v705_v9 = vmul.f32 %v1103_v51, %v1920_v15  ;;  %v566_v2 = vsel %vm565_vm10, %v1902_v25, %v564_v18  ;;  %vm588_vm13 = vcmp.eq.f32.partialorder %v1948_v50, 0.0  ;;  %v328_v25 = vpop.xlane.xlu0 %327 }
 0x142   : > { %1110 = vrsqrt.f32 %v1969_v23  ;;  %v2294_v43 = vsub.f32 %v2292_v26, %v2293_v1  ;;  %v569_v16 = vsel %vm567_vm11, %v568_v39, %v566_v2  ;;  %v589_v21 = vand.u32 2147483648, %v1948_v50 }
 0x143   : > { %v861_v30 = vadd.f32 %v1833_v36, %v830_v47  ;;  %v729_v48 = vsub.f32 2.0, %v705_v9  ;;  %v659_v15 = vadd.f32 1e-06, %v569_v16  ;;  %vm579_vm14 = vcmp.eq.f32.partialorder %v1964_v10, inf }
 0x144   : > { %v802_v0 = vmul.f32 %v2294_v43, %v754_v29  ;;  %1112 = vrsqrt.f32 %v1979_v19  ;;  %v1105_v17 = vpop.eup %1104  ;;  %vm581_vm15 = vcmp.eq.f32.partialorder %v1964_v10, 0.0  ;;  %v582_v38 = vand.u32 2147483648, %v1964_v10 }
 0x145   : > { %885 = vst [vmem:[%s1859_s7 + $0x40] sm:$0xff] %v861_v30  ;;  %v426_v56 = vsub.f32 %v326_v42, %v1658_v35  ;;  %v753_v55 = vmul.f32 %v1103_v51, %v729_v48  ;;  %1114 = vrcp.f32 %v659_v15  ;;  %v585_v34 = vmul.f32 %v1105_v17, %v1948_v50  ;;  %v2298_v17 = vld [vmem:[#allocation17_spill] sm:$0xff] }
 0x146   : > { %v833_v58 = vmul.f32 %v1813_v54, %v802_v0  ;;  %v425_v46 = vsub.f32 %v324_v57, %v1661_v13  ;;  %v428_v27 = vsub.f32 %v330_v33, %v1671_v20  ;;  %v427_v45 = vsub.f32 %v328_v25, %v1925_v53  ;;  %v2063_v25 = vld [vmem:[%s1386_s10 + $0x70] sm:$0xff] }
 0x147   : > { %v450_v7 = vmax.f32 %v426_v56, 0.0  ;;  %v2297_v44 = vsub.f32 %v2295_v63, %v2296_v11  ;;  %v587_v35 = vsel %vm586_vm12, %v1948_v50, %v585_v34  ;;  %vm600_vm0 = vcmp.eq.f32.partialorder %v1969_v23, inf  ;;  %v2073_v34 = vld [vmem:[%s1386_s10 + $0x88] sm:$0xff] }
 0x148   : > { %v864_v31 = vadd.f32 %v1833_v36, %v833_v58  ;;  %v449_v8 = vmax.f32 %v425_v46, 0.0  ;;  %v1107_v13 = vpop.eup %1106  ;;  %v590_v42 = vsel %vm588_vm13, %v589_v21, %v587_v35  ;;  %vm602_vm1 = vcmp.eq.f32.partialorder %v1969_v23, 0.0  ;;  %v1148_v21 = vld [vmem:[%s1386_s10 + $0x78] sm:$0xff]  ;;  %v2302_v46 = vld [vmem:[#allocation18_spill] sm:$0xff] }
 0x149   : > { %v801_v61 = vmul.f32 %v2297_v44, %v753_v55  ;;  %v603_v20 = vand.u32 2147483648, %v1969_v23  ;;  %v2018_v53 = vmul.f32 0.007874016, %v450_v7  ;;  %v2021_v22 = vadd.f32 1e-06, %v590_v42 }
 0x14a   : > { %888 = vst [vmem:[%s1859_s7 + $0x58] sm:$0xff] %v864_v31  ;;  %v578_v40 = vmul.f32 %v1107_v13, %v1964_v10  ;;  %v2024_v32 = vmul.f32 0.007874016, %v449_v8  ;;  %v1109_v5 = vpop.eup %1108  ;;  %v452_v50 = vmax.f32 %v428_v27, 0.0  ;;  %v451_v57 = vmax.f32 %v427_v45, 0.0  ;;  %v332_v27 = vpop.xlane.xlu0 %331 }
 0x14b   : > { %v832_v4 = vmul.f32 %v1813_v54, %v801_v61  ;;  %1116 = vrsqrt.f32 %v2018_v53  ;;  %v430_v59 = vsub.f32 %v334_v28, %v1930_v41  ;;  %v708_v24 = vmul.f32 %v1109_v5, %v660_v52 }
 0x14c   : > { %v1111_v3 = vpop.eup %1110  ;;  %1118 = vrcp.f32 %v2021_v22  ;;  %v580_v14 = vsel %vm579_vm14, %v1964_v10, %v578_v40  ;;  %vm593_vm2 = vcmp.eq.f32.partialorder %v1979_v19, inf  ;;  %vm595_vm3 = vcmp.eq.f32.partialorder %v1979_v19, 0.0 }
 0x14d   : > { %v863_v37 = vadd.f32 %v1833_v36, %v832_v4  ;;  %v583_v18 = vsel %vm581_vm15, %v582_v38, %v580_v14  ;;  %v599_v39 = vmul.f32 %v1111_v3, %v1969_v23  ;;  %1120 = vrsqrt.f32 %v2024_v32  ;;  %v2300_v38 = vld [vmem:[#allocation15_spill] sm:$0xff]  ;;  %v2304_v4 = vld [vmem:[#allocation16_spill] sm:$0xff] }
 0x14e   : > { %v1113_v41 = vpop.eup %1112  ;;  %v732_v51 = vsub.f32 2.0, %v708_v24  ;;  %v2039_v47 = vadd.f32 1e-06, %v583_v18  ;;  %v596_v52 = vand.u32 2147483648, %v1979_v19  ;;  %v2047_v9 = vmul.f32 0.007874016, %v452_v50 }
 0x14f   : > { %887 = vst [vmem:[%s1859_s7 + $0x50] sm:$0xff] %v863_v37  ;;  %v601_v10 = vsel %vm600_vm0, %v1969_v23, %v599_v39  ;;  %v592_v29 = vmul.f32 %v1113_v41, %v1979_v19  ;;  %v2049_v2 = vmul.f32 0.007874016, %v451_v57  ;;  %v1115_v33 = vpop.eup %1114  ;;  %v454_v1 = vmax.f32 %v430_v59, 0.0  ;;  %v2299_v23 = vld [vmem:[#allocation10_spill] sm:$0xff] }
 0x150   : > { %v756_v30 = vmul.f32 %v1109_v5, %v732_v51  ;;  %1122 = vrcp.f32 %v2039_v47  ;;  %v604_v26 = vsel %vm602_vm1, %v603_v20, %v601_v10  ;;  %v707_v43 = vmul.f32 %v1115_v33, %v659_v15  ;;  %v2303_v20 = vld [vmem:[#allocation11_spill] sm:$0xff] }
 0x151   : > { %v2054_v0 = vadd.f32 1e-06, %v604_v26  ;;  %v594_v16 = vsel %vm593_vm2, %v1979_v19, %v592_v29  ;;  %1124 = vrsqrt.f32 %v2047_v9  ;;  %v782_v48 = vsub.f32 %v1148_v21, %v1584_v60 }
 0x152   : > { %v781_v58 = vsub.f32 %v2063_v25, %v2298_v17  ;;  %v2301_v56 = vsub.f32 %v2299_v23, %v2300_v38  ;;  %v597_v55 = vsel %vm595_vm3, %v596_v52, %v594_v16  ;;  %v784_v31 = vsub.f32 %v2073_v34, %v2302_v46 }
 0x153   : > { %v731_v7 = vsub.f32 2.0, %v707_v43  ;;  %1126 = vrcp.f32 %v2054_v0  ;;  %v663_v60 = vadd.f32 1e-06, %v597_v55  ;;  %vm614_vm4 = vcmp.eq.f32.partialorder %v2018_v53, inf }
 0x154   : > { %v804_v15 = vmul.f32 %v2301_v56, %v756_v30  ;;  %1128 = vrsqrt.f32 %v2049_v2  ;;  %v405_v19 = vmul.f32 %v1933_v6, %v1667_v62  ;;  %vm616_vm5 = vcmp.eq.f32.partialorder %v2018_v53, 0.0 }
 0x155   : > { %v1117_v63 = vpop.eup %1116  ;;  %v755_v11 = vmul.f32 %v1115_v33, %v731_v7  ;;  %1130 = vrcp.f32 %v663_v60  ;;  %v2084_v44 = vmul.f32 0.007874016, %v454_v1  ;;  %v617_v28 = vand.u32 2147483648, %v2018_v53 }
 0x156   : > { %v835_v45 = vmul.f32 %v1813_v54, %v804_v15  ;;  %v1119_v61 = vpop.eup %1118  ;;  %v613_v8 = vmul.f32 %v1117_v63, %v2018_v53  ;;  %v429_v13 = vsub.f32 %v332_v27, %v405_v19  ;;  %v2305_v6 = vsub.f32 %v2303_v20, %v2304_v4 }
 0x157   : > { %v1121_v42 = vpop.eup %1120  ;;  %v710_v5 = vmul.f32 %v1119_v61, %v2021_v22  ;;  %vm607_vm6 = vcmp.eq.f32.partialorder %v2024_v32, inf  ;;  %1132 = vrsqrt.f32 %v2084_v44  ;;  %vm609_vm7 = vcmp.eq.f32.partialorder %v2024_v32, 0.0 }
 0x158   : > { %v866_v35 = vadd.f32 %v1833_v36, %v835_v45  ;;  %v803_v40 = vmul.f32 %v2305_v6, %v755_v11  ;;  %v615_v50 = vsel %vm614_vm4, %v2018_v53, %v613_v8  ;;  %v606_v57 = vmul.f32 %v1121_v42, %v2024_v32  ;;  %v2306_v8 = vld [vmem:[#allocation19_spill] sm:$0xff] }
 0x159   : > { %v610_v59 = vand.u32 2147483648, %v2024_v32  ;;  %v734_v37 = vsub.f32 2.0, %v710_v5  ;;  %v618_v22 = vsel %vm616_vm5, %v617_v28, %v615_v50  ;;  %v453_v24 = vmax.f32 %v429_v13, 0.0 }
 0x15a   : > { %890 = vst [vmem:[%s1859_s7 + $0x68] sm:$0xff] %v866_v35  ;;  %v834_v3 = vmul.f32 %v1813_v54, %v803_v40  ;;  %v1123_v14 = vpop.eup %1122  ;;  %v666_v18 = vadd.f32 1e-06, %v618_v22  ;;  %v608_v39 = vsel %vm607_vm6, %v2024_v32, %v606_v57  ;;  %vm628_vm8 = vcmp.eq.f32.partialorder %v2047_v9, inf  ;;  %v1151_v35 = vld [vmem:[%s1386_s10 + $0x80] sm:$0xff] }
 0x15b   : > { %vm630_vm9 = vcmp.eq.f32.partialorder %v2047_v9, 0.0  ;;  %v1125_v41 = vpop.eup %1124  ;;  %v758_v52 = vmul.f32 %v1119_v61, %v734_v37  ;;  %v709_v10 = vmul.f32 %v1123_v14, %v2039_v47  ;;  %v611_v29 = vsel %vm609_vm7, %v610_v59, %v608_v39 }
 0x15c   : > { %v865_v51 = vadd.f32 %v1833_v36, %v834_v3  ;;  %1134 = vrcp.f32 %v666_v18  ;;  %v665_v53 = vadd.f32 1e-06, %v611_v29  ;;  %v627_v33 = vmul.f32 %v1125_v41, %v2047_v9  ;;  %v2308_v29 = vld [vmem:[#allocation21_spill] sm:$0xff] }
 0x15d   : > { %v2111_v30 = vmul.f32 0.007874016, %v453_v24  ;;  %v1127_v26 = vpop.eup %1126  ;;  %v806_v32 = vmul.f32 %v782_v48, %v758_v52  ;;  %v733_v1 = vsub.f32 2.0, %v709_v10  ;;  %v631_v43 = vand.u32 2147483648, %v2047_v9  ;;  %v1152_v24 = vld [vmem:[%s1386_s10 + $0x98] sm:$0xff]  ;;  %v1153_v10 = vld [vmem:[%s1386_s10 + $0x90] sm:$0xff] }
 0x15e   : > { %889 = vst [vmem:[%s1859_s7 + $0x60] sm:$0xff] %v865_v51  ;;  %vm621_vm10 = vcmp.eq.f32.partialorder %v2049_v2, inf  ;;  %v1129_v16 = vpop.eup %1128  ;;  %v712_v21 = vmul.f32 %v1127_v26, %v2054_v0  ;;  %1136 = vrcp.f32 %v665_v53  ;;  %v629_v47 = vsel %vm628_vm8, %v2047_v9, %v627_v33 }
 0x15f   : > { %v624_v23 = vand.u32 2147483648, %v2049_v2  ;;  %v1131_v38 = vpop.eup %1130  ;;  %v837_v56 = vmul.f32 %v1813_v54, %v806_v32  ;;  %v757_v15 = vmul.f32 %v1123_v14, %v733_v1  ;;  %v632_v48 = vsel %vm630_vm9, %v631_v43, %v629_v47  ;;  %v2307_v14 = vld [vmem:[#allocation20_spill] sm:$0xff] }
 0x160   : > { %v620_v55 = vmul.f32 %v1129_v16, %v2049_v2  ;;  %v736_v7 = vsub.f32 2.0, %v712_v21  ;;  %v711_v0 = vmul.f32 %v1131_v38, %v663_v60  ;;  %v668_v27 = vadd.f32 1e-06, %v632_v48  ;;  %v2309_v48 = vld [vmem:[#allocation22_spill] sm:$0xff] }
 0x161   : > { %1138 = vrsqrt.f32 %v2111_v30  ;;  %v1133_v45 = vpop.eup %1132  ;;  %v868_v19 = vadd.f32 %v1833_v36, %v837_v56  ;;  %v805_v63 = vmul.f32 %v781_v58, %v757_v15  ;;  %vm623_vm11 = vcmp.eq.f32.partialorder %v2049_v2, 0.0  ;;  %v1154_v15 = vld [vmem:[%s1386_s10 + $0xa8] sm:$0xff] }
 0x162   : > { %v622_v9 = vsel %vm621_vm10, %v2049_v2, %v620_v55  ;;  %v760_v11 = vmul.f32 %v1127_v26, %v736_v7  ;;  %v735_v61 = vsub.f32 2.0, %v711_v0  ;;  %1140 = vrcp.f32 %v668_v27 }
 0x163   : > { %v625_v60 = vsel %vm623_vm11, %v624_v23, %v622_v9  ;;  %v783_v28 = vsub.f32 %v1151_v35, %v2306_v8  ;;  %892 = vst [vmem:[%s1859_s7 + $0x78] sm:$0xff] %v868_v19  ;;  %v836_v13 = vmul.f32 %v1813_v54, %v805_v63  ;;  %v641_v25 = vmul.f32 %v1133_v45, %v2084_v44 }
 0x164   : > { %v667_v42 = vadd.f32 1e-06, %v625_v60  ;;  %v808_v17 = vmul.f32 %v784_v31, %v760_v11  ;;  %v759_v58 = vmul.f32 %v1131_v38, %v735_v61  ;;  %vm642_vm12 = vcmp.eq.f32.partialorder %v2084_v44, inf  ;;  %v1155_v11 = vld [vmem:[%s1386_s10 + $0xa0] sm:$0xff] }
 0x165   : > { %v645_v2 = vand.u32 2147483648, %v2084_v44  ;;  %v867_v20 = vadd.f32 %v1833_v36, %v836_v13  ;;  %v643_v4 = vsel %vm642_vm12, %v2084_v44, %v641_v25  ;;  %vm644_vm13 = vcmp.eq.f32.partialorder %v2084_v44, 0.0  ;;  %v1156_v25 = vld [vmem:[%s1386_s10 + $0xb8] sm:$0xff] }
 0x166   : > { %1142 = vrcp.f32 %v667_v42  ;;  %v1135_v6 = vpop.eup %1134  ;;  %v839_v40 = vmul.f32 %v1813_v54, %v808_v17  ;;  %v807_v5 = vmul.f32 %v783_v28, %v759_v58  ;;  %v786_v39 = vsub.f32 %v1152_v24, %v2307_v14 }
 0x167   : > { %v646_v34 = vsel %vm644_vm13, %v645_v2, %v643_v4  ;;  %891 = vst [vmem:[%s1859_s7 + $0x70] sm:$0xff] %v867_v20  ;;  %v714_v46 = vmul.f32 %v1135_v6, %v666_v18  ;;  %v785_v33 = vsub.f32 %v1153_v10, %v2308_v29  ;;  %vm635_vm14 = vcmp.eq.f32.partialorder %v2111_v30, inf }
 0x168   : > { %v670_v31 = vadd.f32 1e-06, %v646_v34  ;;  %v1137_v50 = vpop.eup %1136  ;;  %v870_v57 = vadd.f32 %v1833_v36, %v839_v40  ;;  %v838_v59 = vmul.f32 %v1813_v54, %v807_v5  ;;  %vm637_vm15 = vcmp.eq.f32.partialorder %v2111_v30, 0.0 }
 0x169   : > { %v738_v3 = vsub.f32 2.0, %v714_v46  ;;  %v713_v37 = vmul.f32 %v1137_v50, %v665_v53  ;;  %v638_v53 = vand.u32 2147483648, %v2111_v30  ;;  %v788_v55 = vsub.f32 %v1154_v15, %v2309_v48 }
 0x16a   : > { %1144 = vrcp.f32 %v670_v31  ;;  %894 = vst [vmem:[%s1859_s7 + $0x88] sm:$0xff] %v870_v57  ;;  %v869_v22 = vadd.f32 %v1833_v36, %v838_v59  ;;  %v787_v61 = vsub.f32 %v1155_v11, %v1625_v49  ;;  %v790_v17 = vsub.f32 %v1156_v25, %v1631_v12  ;;  %v1157_v12 = vld [vmem:[%s1386_s10 + $0xb0] sm:$0xff] }
 0x16b   : > { %v1139_v44 = vpop.eup %1138  ;;  %v762_v41 = vmul.f32 %v1135_v6, %v738_v3  ;;  %v737_v18 = vsub.f32 2.0, %v713_v37  ;;  %v789_v46 = vsub.f32 %v1157_v12, %v1667_v62 }
 0x16c   : > { %v634_v51 = vmul.f32 %v1139_v44, %v2111_v30  ;;  %v1141_v52 = vpop.eup %1140  ;;  %893 = vst [vmem:[%s1859_s7 + $0x80] sm:$0xff] %v869_v22 }
 0x16d   : > { %v810_v26 = vmul.f32 %v786_v39, %v762_v41  ;;  %v761_v32 = vmul.f32 %v1137_v50, %v737_v18  ;;  %v716_v1 = vmul.f32 %v1141_v52, %v668_v27 }
 0x16e   : > { %v636_v43 = vsel %vm635_vm14, %v2111_v30, %v634_v51 }
 0x16f   : > { %v639_v16 = vsel %vm637_vm15, %v638_v53, %v636_v43  ;;  %v841_v47 = vmul.f32 %v1813_v54, %v810_v26  ;;  %v809_v23 = vmul.f32 %v785_v33, %v761_v32  ;;  %v740_v38 = vsub.f32 2.0, %v716_v1 }
 0x170   : > { %v1143_v21 = vpop.eup %1142  ;;  %v669_v56 = vadd.f32 1e-06, %v639_v16 }
 0x171   : > { %v715_v7 = vmul.f32 %v1143_v21, %v667_v42  ;;  %v872_v0 = vadd.f32 %v1833_v36, %v841_v47  ;;  %v840_v27 = vmul.f32 %v1813_v54, %v809_v23  ;;  %v764_v45 = vmul.f32 %v1141_v52, %v740_v38 }
 0x172   : > { %1146 = vrcp.f32 %v669_v56 }
 0x173   : > { %v739_v30 = vsub.f32 2.0, %v715_v7  ;;  %896 = vst [vmem:[%s1859_s7 + $0x98] sm:$0xff] %v872_v0  ;;  %v871_v63 = vadd.f32 %v1833_v36, %v840_v27  ;;  %v812_v9 = vmul.f32 %v788_v55, %v764_v45 }
 0x174   : > { %v1145_v19 = vpop.eup %1144 }
 0x175   : > { %v763_v60 = vmul.f32 %v1143_v21, %v739_v30  ;;  %v718_v35 = vmul.f32 %v1145_v19, %v670_v31  ;;  %895 = vst [vmem:[%s1859_s7 + $0x90] sm:$0xff] %v871_v63  ;;  %v843_v8 = vmul.f32 %v1813_v54, %v812_v9 }
 0x177   : > { %v811_v28 = vmul.f32 %v787_v61, %v763_v60  ;;  %v742_v13 = vsub.f32 2.0, %v718_v35  ;;  %v874_v42 = vadd.f32 %v1833_v36, %v843_v8 }
 0x179   : > { %v842_v58 = vmul.f32 %v1813_v54, %v811_v28  ;;  %v766_v2 = vmul.f32 %v1145_v19, %v742_v13  ;;  %898 = vst [vmem:[%s1859_s7 + $0xa8] sm:$0xff] %v874_v42 }
 0x17b   : > { %v873_v49 = vadd.f32 %v1833_v36, %v842_v58  ;;  %v814_v20 = vmul.f32 %v790_v17, %v766_v2 }
 0x17c   : > { %v1147_v4 = vpop.eup %1146 }
 0x17d   : > { %897 = vst [vmem:[%s1859_s7 + $0xa0] sm:$0xff] %v873_v49  ;;  %v845_v6 = vmul.f32 %v1813_v54, %v814_v20  ;;  %v717_v40 = vmul.f32 %v1147_v4, %v669_v56 }
 0x17f   : > { %v876_v5 = vadd.f32 %v1833_v36, %v845_v6  ;;  %v741_v34 = vsub.f32 2.0, %v717_v40 }
 0x181   : > { %900 = vst [vmem:[%s1859_s7 + $0xb8] sm:$0xff] %v876_v5  ;;  %v765_v31 = vmul.f32 %v1147_v4, %v741_v34 }
 0x183   : > { %v813_v50 = vmul.f32 %v789_v46, %v765_v31 }
 0x185   : > { %v844_v57 = vmul.f32 %v1813_v54, %v813_v50 }
 0x187   : > { %v875_v59 = vadd.f32 %v1833_v36, %v844_v57 }
 0x189   : > { %899 = vst [vmem:[%s1859_s7 + $0xb0] sm:$0xff] %v875_v59 }
 0x18a   : > { %1201 = shalt.err (!%p1198_p2)
}
 0x18b   : > { %s1202_s8 = scalar_lea.hbm %s2192_s25, 3072  ;;  %s1206_s22 = scalar_lea.hbm %s2243_s3, 6144 }
 0x18c   : > { %p1203_p4 = scmp.ne.s32.totalorder %s2192_s25, %s1202_s8  ;;  %p1207_p9 = scmp.lt.u32.totalorder %s2192_s25, %s2243_s3 }
 0x18d   : > { %p1208_p1 = scmp.lt.u32.totalorder %s1206_s22, %s1202_s8  ;;  %p1210_p6 = scmp.lt.u32.totalorder %s1202_s8, %s2192_s25 }
 0x18e   : > { %p1204_p5 = pnand %p1203_p4, %p2310_p11 }
 0x18f   : > { %p1209_p3 = por %p1208_p1, %p1207_p9 }
 0x190   : > { %p1205_p7 = pneg %p1204_p5 }
 0x191   : > { %p1211_p12 = por %p1210_p6, %p1209_p3 }
 0x193   : > { %p1212_p13 = pnand %p1211_p12, %p1205_p7 }
 0x195   : > { %1215 = shalt.err (!%p1212_p13)
}
 0x196   : > { %s1260_s6 = smov 128   ;;  %s1261_s7 = smov 8  }
 0x197   : > { %1004 = dma.vmem_to_hbm [thread:$0]  (%p2310_p11), %s2195_s17, 3072, %s2192_s25, %s902_s26, %s1260_s6, %s1260_s6, %s1261_s7  }
 0x198 PF: > { %s930_s11 = sand.u32 1, %s1242_s12   ;;  %p2311_p8 = scmp.ne.s32.totalorder %s2264_s24, 0 }
 0x199   : > { %p2312_p10 = scmp.ge.s32.totalorder %s1254_s15, 2  ;;  %s931_s19 = scalar_lea.sflag [#allocation4], %s930_s11 }
 0x19b   : > { %p1011_p0 = pnand %p2312_p10, %p2311_p8 }
 0x19d   : > { %1237 = dma.done.wait (!%p1011_p0), %s931_s19, 3072  }
 0x19e   : > { %1239 = vsyncadd (!%p1011_p0), %s931_s19, 4294964224  ;;  %p16_p2 = scmp.ge.s32.totalorder %s1307_s18, 4   ;;  %s2313_s12 = smov %s1246_s13 }
 0x19f   : > { %s2314_s13 = smov %s1250_s14  ;;  %s2315_s14 = smov %s1319_s21 }
 0x1a0   : > { %s2316_s15 = smov %s1307_s18  ;;  %18 = sbr.rel (!%p16_p2) target bundleno = 5 (0x5), region = 77 }
 0x1a7   :  { %936 = vsyncpa [#allocation3], 1 }
 0x1a8   :  { %938 = vsyncpa [#allocation3 + $0x1], 1 }
 0x1a9   :  { %939 = vsyncpa [#allocation4], 1 }
 0x1aa   :  { %941 = vsyncpa [#allocation4 + $0x1], 1 }

</bundles_post_ra>
